<compile_context>
chip_gen: v7x
topology: tpu7x:2x2x1
jax: 0.10.0
libtpu: 0.0.40
codegen_flags: <defaults>
</compile_context>

<pallas_src>
import jax
import jax.numpy as jnp
from jax.experimental import pallas as pl
from jax.experimental.pallas import tpu as pltpu

HIDDEN = 256
LANE = 128


def _round_up(x, m):
    return (x + m - 1) // m * m


def _actor_kernel(scale_ref, s_ref, w1_ref, b1_ref, w2_ref, b2_ref,
                  w3_ref, b3_ref, o_ref):
    # Layer 1: Linear(state_dim_pad -> 256) + ReLU  (bf16 MXU, f32 acc)
    x = s_ref[...].astype(jnp.bfloat16)
    h = jnp.dot(x, w1_ref[...], preferred_element_type=jnp.float32)
    h = jnp.maximum(h + b1_ref[...], 0.0)

    # Layer 2: Linear(256 -> 256) + ReLU
    h = jnp.dot(h.astype(jnp.bfloat16), w2_ref[...],
                preferred_element_type=jnp.float32)
    h = jnp.maximum(h + b2_ref[...], 0.0)

    # Layer 3: Linear(256 -> action_dim_pad), tanh (EUP), runtime scale (SMEM)
    h = jnp.dot(h.astype(jnp.bfloat16), w3_ref[...],
                preferred_element_type=jnp.float32)
    out = scale_ref[0, 0] * jnp.tanh(h + b3_ref[...])
    o_ref[...] = out.astype(o_ref.dtype)


def actor_forward(state, params, max_action, *, batch_tile=512):
    """state: (B, state_dim) float.  params: padded bf16 weights / f32 biases."""
    B, S = state.shape
    S_pad, H = params["w1"].shape
    A_pad = params["w3"].shape[1]
    action_dim = params["action_dim"]

    # Pad batch to a multiple of 8 (f32 sublane tiling) and of the batch tile.
    B_pad = _round_up(max(B, 8), 8)
    tb = min(batch_tile, B_pad)
    B_pad = _round_up(B_pad, tb)
    grid = (B_pad // tb,)

    state_p = jnp.pad(state.astype(jnp.float32),
                      ((0, B_pad - B), (0, S_pad - S)))
    scale = jnp.full((1, 1), max_action, dtype=jnp.float32)

    smem_spec = pl.BlockSpec(memory_space=pltpu.MemorySpace.SMEM)

    def resident(shape):
        # Same block every iteration -> weight/bias stays resident in VMEM.
        return pl.BlockSpec(shape, lambda i: (0, 0))

    out = pl.pallas_call(
        _actor_kernel,
        out_shape=jax.ShapeDtypeStruct((B_pad, A_pad), jnp.float32),
        grid=grid,
        in_specs=[
            smem_spec,                                     # max_action scalar
            pl.BlockSpec((tb, S_pad), lambda i: (i, 0)),   # state tile (pipelined)
            resident((S_pad, H)), resident((1, H)),        # w1, b1
            resident((H, H)), resident((1, H)),            # w2, b2
            resident((H, A_pad)), resident((1, A_pad)),    # w3, b3
        ],
        out_specs=pl.BlockSpec((tb, A_pad), lambda i: (i, 0)),
        compiler_params=pltpu.CompilerParams(
            dimension_semantics=("parallel",),
            vmem_limit_bytes=32 * 1024 * 1024,
        ),
    )(scale, state_p,
      params["w1"], params["b1"],
      params["w2"], params["b2"],
      params["w3"], params["b3"])

    return out[:B, :action_dim]


def init_actor_params(key, state_dim, action_dim, hidden=HIDDEN):
    """PyTorch-style init U(-1/sqrt(fan_in), 1/sqrt(fan_in)).

    Weights are (in_features, out_features), zero-padded to lane-aligned
    shapes and stored in bf16 (MXU operands); biases stay f32, padded on the
    output dim."""
    ks = jax.random.split(key, 6)
    s_pad = _round_up(state_dim, LANE)
    a_pad = _round_up(action_dim, LANE)

    def layer(kw, kb, fan_in, fan_out, pad_in, pad_out):
        bound = 1.0 / (float(fan_in) ** 0.5)
        w = jax.random.uniform(kw, (fan_in, fan_out), jnp.float32, -bound, bound)
        b = jax.random.uniform(kb, (1, fan_out), jnp.float32, -bound, bound)
        w = jnp.pad(w, ((0, pad_in - fan_in), (0, pad_out - fan_out)))
        b = jnp.pad(b, ((0, 0), (0, pad_out - fan_out)))
        return w.astype(jnp.bfloat16), b

    w1, b1 = layer(ks[0], ks[1], state_dim, hidden, s_pad, hidden)
    w2, b2 = layer(ks[2], ks[3], hidden, hidden, hidden, hidden)
    w3, b3 = layer(ks[4], ks[5], hidden, action_dim, hidden, a_pad)
    return dict(w1=w1, b1=b1, w2=w2, b2=b2, w3=w3, b3=b3,
                state_dim=state_dim, action_dim=action_dim)


def actor_reference(state, params, max_action):
    """Pure-JAX reference (f32 math on the same weights)."""
    S = state.shape[1]
    A = params["action_dim"]
    w1 = params["w1"].astype(jnp.float32)[:S, :]
    w2 = params["w2"].astype(jnp.float32)
    w3 = params["w3"].astype(jnp.float32)[:, :A]
    b1, b2, b3 = params["b1"], params["b2"], params["b3"][:, :A]
    h = jnp.maximum(state @ w1 + b1, 0.0)
    h = jnp.maximum(h @ w2 + b2, 0.0)
    return max_action * jnp.tanh(h @ w3 + b3)


if __name__ == "__main__":
    key = jax.random.PRNGKey(0)
    k_param, k_state = jax.random.split(key)

    batch = 8
    state_dim = 16
    action_dim = 4
    max_action = 2.0

    params = init_actor_params(k_param, state_dim, action_dim)
    state = jax.random.normal(k_state, (batch, state_dim), jnp.float32)

    out = actor_forward(state, params, max_action)
    out = jax.block_until_ready(out)

    ref = actor_reference(state, params, max_action)
    assert out.shape == (batch, action_dim), out.shape
    # bf16 MXU operands with f32 accumulation -> ~1e-3 level deviation allowed.
    assert jnp.allclose(out, ref, atol=2e-2, rtol=2e-2), "mismatch vs reference"

    print("KERNEL_OK")
</pallas_src>

<mosaic_0001>
module attributes {stable_mosaic.version = 11 : i64} {
  func.func @_actor_kernel(%arg0: i32, %arg1: memref<1x1xf32, #tpu.memory_space<smem>>, %arg2: memref<8x128xf32, #tpu.memory_space<vmem>>, %arg3: memref<128x256xbf16, #tpu.memory_space<vmem>>, %arg4: memref<1x256xf32, #tpu.memory_space<vmem>>, %arg5: memref<256x256xbf16, #tpu.memory_space<vmem>>, %arg6: memref<1x256xf32, #tpu.memory_space<vmem>>, %arg7: memref<256x128xbf16, #tpu.memory_space<vmem>>, %arg8: memref<1x128xf32, #tpu.memory_space<vmem>>, %arg9: memref<8x128xf32, #tpu.memory_space<vmem>>) attributes {dimension_semantics = [#tpu.dimension_semantics<parallel>], iteration_bounds = array<i64: 1>, scalar_prefetch = 0 : i64, scratch_operands = 0 : i64, tpu.core_type = #tpu.core_type<tc>, window_params = [{transform_indices = @transform_0, window_bounds = array<i64: 1, 1>}, {transform_indices = @transform_1, window_bounds = array<i64: 8, 128>}, {pipeline_mode = #tpu.pipeline_mode<synchronous>, transform_indices = @transform_2, window_bounds = array<i64: 128, 256>}, {pipeline_mode = #tpu.pipeline_mode<synchronous>, transform_indices = @transform_3, window_bounds = array<i64: 1, 256>}, {pipeline_mode = #tpu.pipeline_mode<synchronous>, transform_indices = @transform_4, window_bounds = array<i64: 256, 256>}, {pipeline_mode = #tpu.pipeline_mode<synchronous>, transform_indices = @transform_5, window_bounds = array<i64: 1, 256>}, {pipeline_mode = #tpu.pipeline_mode<synchronous>, transform_indices = @transform_6, window_bounds = array<i64: 256, 128>}, {pipeline_mode = #tpu.pipeline_mode<synchronous>, transform_indices = @transform_7, window_bounds = array<i64: 1, 128>}, {transform_indices = @transform_8, window_bounds = array<i64: 8, 128>}]} {
    %c0 = arith.constant 0 : index
    %c0_0 = arith.constant 0 : index
    %0 = vector.load %arg2[%c0, %c0_0] : memref<8x128xf32, #tpu.memory_space<vmem>>, vector<8x128xf32>
    %1 = arith.truncf %0 : vector<8x128xf32> to vector<8x128xbf16>
    %c0_1 = arith.constant 0 : index
    %c0_2 = arith.constant 0 : index
    %2 = vector.load %arg3[%c0_1, %c0_2] : memref<128x256xbf16, #tpu.memory_space<vmem>>, vector<128x256xbf16>
    %cst = arith.constant dense<0.000000e+00> : vector<8x256xf32>
    %3 = tpu.matmul %1, %2, %cst {dimension_numbers = #tpu.dot_dimension_numbers<[1], [0], [0], [1], [0, 0, 1, 1], [], []>} : vector<8x128xbf16>, vector<128x256xbf16>, vector<8x256xf32> -> vector<8x256xf32>
    %c0_3 = arith.constant 0 : index
    %c0_4 = arith.constant 0 : index
    %4 = vector.load %arg4[%c0_3, %c0_4] : memref<1x256xf32, #tpu.memory_space<vmem>>, vector<1x256xf32>
    %5 = vector.broadcast %4 : vector<1x256xf32> to vector<8x256xf32>
    %6 = arith.addf %3, %5 : vector<8x256xf32>
    %cst_5 = arith.constant 0.000000e+00 : f32
    %7 = vector.broadcast %cst_5 : f32 to vector<8x256xf32>
    %8 = arith.maximumf %6, %7 : vector<8x256xf32>
    %9 = arith.truncf %8 : vector<8x256xf32> to vector<8x256xbf16>
    %c0_6 = arith.constant 0 : index
    %c0_7 = arith.constant 0 : index
    %10 = vector.load %arg5[%c0_6, %c0_7] : memref<256x256xbf16, #tpu.memory_space<vmem>>, vector<256x256xbf16>
    %cst_8 = arith.constant dense<0.000000e+00> : vector<8x256xf32>
    %11 = tpu.matmul %9, %10, %cst_8 {dimension_numbers = #tpu.dot_dimension_numbers<[1], [0], [0], [1], [0, 0, 1, 1], [], []>} : vector<8x256xbf16>, vector<256x256xbf16>, vector<8x256xf32> -> vector<8x256xf32>
    %c0_9 = arith.constant 0 : index
    %c0_10 = arith.constant 0 : index
    %12 = vector.load %arg6[%c0_9, %c0_10] : memref<1x256xf32, #tpu.memory_space<vmem>>, vector<1x256xf32>
    %13 = vector.broadcast %12 : vector<1x256xf32> to vector<8x256xf32>
    %14 = arith.addf %11, %13 : vector<8x256xf32>
    %cst_11 = arith.constant 0.000000e+00 : f32
    %15 = vector.broadcast %cst_11 : f32 to vector<8x256xf32>
    %16 = arith.maximumf %14, %15 : vector<8x256xf32>
    %17 = arith.truncf %16 : vector<8x256xf32> to vector<8x256xbf16>
    %c0_12 = arith.constant 0 : index
    %c0_13 = arith.constant 0 : index
    %18 = vector.load %arg7[%c0_12, %c0_13] : memref<256x128xbf16, #tpu.memory_space<vmem>>, vector<256x128xbf16>
    %cst_14 = arith.constant dense<0.000000e+00> : vector<8x128xf32>
    %19 = tpu.matmul %17, %18, %cst_14 {dimension_numbers = #tpu.dot_dimension_numbers<[1], [0], [0], [1], [0, 0, 1, 1], [], []>} : vector<8x256xbf16>, vector<256x128xbf16>, vector<8x128xf32> -> vector<8x128xf32>
    %c0_15 = arith.constant 0 : index
    %c0_16 = arith.constant 0 : index
    %20 = memref.load %arg1[%c0_15, %c0_16] : memref<1x1xf32, #tpu.memory_space<smem>>
    %c0_17 = arith.constant 0 : index
    %c0_18 = arith.constant 0 : index
    %21 = vector.load %arg8[%c0_17, %c0_18] : memref<1x128xf32, #tpu.memory_space<vmem>>, vector<1x128xf32>
    %22 = vector.broadcast %21 : vector<1x128xf32> to vector<8x128xf32>
    %23 = arith.addf %19, %22 : vector<8x128xf32>
    %24 = math.tanh %23 : vector<8x128xf32>
    %25 = vector.broadcast %20 : f32 to vector<8x128xf32>
    %26 = arith.mulf %25, %24 : vector<8x128xf32>
    %c0_19 = arith.constant 0 : index
    %c0_20 = arith.constant 0 : index
    %27 = vector.load %arg9[%c0_19, %c0_20] : memref<8x128xf32, #tpu.memory_space<vmem>>, vector<8x128xf32>
    tpu.vector_store %arg9[%c0_19, %c0_20], %26 {strides = array<i32>} : memref<8x128xf32, #tpu.memory_space<vmem>>, vector<8x128xf32>,
    return
  }
  func.func @transform_0(%arg0: i32) -> (i32, i32) {
    %c0_i32 = arith.constant 0 : i32
    %c0_i32_0 = arith.constant 0 : i32
    %c0_i32_1 = arith.constant 0 : i32
    return %c0_i32, %c0_i32_0 : i32, i32
  }
  func.func @transform_1(%arg0: i32) -> (i32, i32) {
    %c0_i32 = arith.constant 0 : i32
    %c0_i32_0 = arith.constant 0 : i32
    return %arg0, %c0_i32 : i32, i32
  }
  func.func @transform_2(%arg0: i32) -> (i32, i32) {
    %c0_i32 = arith.constant 0 : i32
    %c0_i32_0 = arith.constant 0 : i32
    %c0_i32_1 = arith.constant 0 : i32
    return %c0_i32, %c0_i32_0 : i32, i32
  }
  func.func @transform_3(%arg0: i32) -> (i32, i32) {
    %c0_i32 = arith.constant 0 : i32
    %c0_i32_0 = arith.constant 0 : i32
    %c0_i32_1 = arith.constant 0 : i32
    return %c0_i32, %c0_i32_0 : i32, i32
  }
  func.func @transform_4(%arg0: i32) -> (i32, i32) {
    %c0_i32 = arith.constant 0 : i32
    %c0_i32_0 = arith.constant 0 : i32
    %c0_i32_1 = arith.constant 0 : i32
    return %c0_i32, %c0_i32_0 : i32, i32
  }
  func.func @transform_5(%arg0: i32) -> (i32, i32) {
    %c0_i32 = arith.constant 0 : i32
    %c0_i32_0 = arith.constant 0 : i32
    %c0_i32_1 = arith.constant 0 : i32
    return %c0_i32, %c0_i32_0 : i32, i32
  }
  func.func @transform_6(%arg0: i32) -> (i32, i32) {
    %c0_i32 = arith.constant 0 : i32
    %c0_i32_0 = arith.constant 0 : i32
    %c0_i32_1 = arith.constant 0 : i32
    return %c0_i32, %c0_i32_0 : i32, i32
  }
  func.func @transform_7(%arg0: i32) -> (i32, i32) {
    %c0_i32 = arith.constant 0 : i32
    %c0_i32_0 = arith.constant 0 : i32
    %c0_i32_1 = arith.constant 0 : i32
    return %c0_i32, %c0_i32_0 : i32, i32
  }
  func.func @transform_8(%arg0: i32) -> (i32, i32) {
    %c0_i32 = arith.constant 0 : i32
    %c0_i32_0 = arith.constant 0 : i32
    return %arg0, %c0_i32 : i32, i32
  }
}

</mosaic_0001>

<bundles_post_ra>
// kernel: tpu_custom_call.1
= control target key start
LH: loop header
LB: loop body
LE: loop exit
PB: predicated region body
PF: predicated region fallthrough
CT: control target
= control target key end

     0   :  { %14 = vsyncpa [#allocation4], 0  ;;  %s1124_s0 = inlined_call_operand.<no memory space> [shape: f32[1,1], index: 0, kind: input, shape index: {}]   ;;  %s1125_s1 = inlined_call_operand.hbm [shape: f32[8,128], index: 1, kind: input, shape index: {}]   ;;  %s1126_s2 = inlined_call_operand.hbm [shape: bf16[128,256], index: 2, kind: input, shape index: {}]   ;;  %s1127_s3 = inlined_call_operand.vmem [shape: f32[1,256], index: 3, kind: input, shape index: {}]   ;;  %s1128_s4 = inlined_call_operand.hbm [shape: bf16[256,256], index: 4, kind: input, shape index: {}]   ;;  %s1129_s5 = inlined_call_operand.vmem [shape: f32[1,256], index: 5, kind: input, shape index: {}]   ;;  %s1130_s6 = inlined_call_operand.hbm [shape: bf16[256,128], index: 6, kind: input, shape index: {}]   ;;  %s1131_s7 = inlined_call_operand.vmem [shape: f32[1,128], index: 7, kind: input, shape index: {}]   ;;  %s1132_s8 = inlined_call_operand.hbm [shape: f32[8,128], index: 8, kind: output, shape index: {}]  }
   0x1   :  { %15 = vsyncpa [#allocation7], 0 }
   0x2   :  { %16 = vsyncpa [#allocation10], 0 }
   0x3   :  { %17 = vsyncpa [#allocation5], 0  ;;  %s991_s27 = smov [#allocation6]   ;;  %s873_s9 = scalar_lea.hbm %s1126_s2, 2048 }
   0x4   :  { %s35_s28 = sshll.u32 %s991_s27, 4  ;;  %p874_p0 = scmp.ne.s32.totalorder %s1126_s2, %s873_s9  ;;  %s36_s28 = int_to_ptr.vmem [resolvable:$true] %s35_s28 }
   0x5   :  { %p877_p1 = scmp.lt.u32.totalorder %s873_s9, %s1126_s2 }
   0x7   :  { %p879_p2 = pnand %p877_p1, %p874_p0 }
   0x9   :  { %882 = shalt.err (!%p879_p2)
}
   0xa   :  { %s883_s14 = scalar_lea.vmem %s36_s28, 2048  ;;  %p888_p4 = scmp.lt.s32.totalorder %s36_s28, %s36_s28 }
   0xb   :  { %p884_p3 = scmp.ne.s32.totalorder %s36_s28, %s883_s14  ;;  %p889_p5 = scmp.lt.s32.totalorder %s883_s14, %s883_s14 }
   0xd   :  { %p890_p6 = por %p889_p5, %p888_p4 }
   0xf   :  { %p891_p7 = pnand %p890_p6, %p884_p3 }
  0x11   :  { %894 = shalt.err (!%p891_p7)
}
  0x12   :  { %s992_s15 = smov 128   ;;  %s993_s16 = smov 8  }
  0x13   :  { %41 = dma.hbm_to_vmem [thread:$0]  %s1126_s2, 2048, %s36_s28, [#allocation7], %s992_s15, %s992_s15, %s993_s16  }
  0x14   :  { %s994_s19 = smov [#allocation3]   ;;  %s995_s21 = smov [#allocation8]  }
  0x15   :  { %s26_s20 = sshll.u32 %s994_s19, 4  ;;  %s49_s22 = sshll.u32 %s995_s21, 4  ;;  %s27_s20 = int_to_ptr.vmem [resolvable:$true] %s26_s20  ;;  %s50_s22 = int_to_ptr.vmem [resolvable:$true] %s49_s22 }
  0x16   :  { %s895_s25 = scalar_lea.hbm %s1125_s1, 128 }
  0x17   :  { %p896_p8 = scmp.ne.s32.totalorder %s1125_s1, %s895_s25  ;;  %p899_p9 = scmp.lt.u32.totalorder %s895_s25, %s1125_s1 }
  0x19   :  { %p901_p10 = pnand %p899_p9, %p896_p8 }
  0x1b   :  { %904 = shalt.err (!%p901_p10)
}
  0x1c   :  { %s905_s2 = scalar_lea.vmem %s27_s20, 128  ;;  %p910_p12 = scmp.lt.s32.totalorder %s27_s20, %s27_s20 }
  0x1d   :  { %p906_p11 = scmp.ne.s32.totalorder %s27_s20, %s905_s2  ;;  %p911_p13 = scmp.lt.s32.totalorder %s905_s2, %s905_s2 }
  0x1f   :  { %p912_p0 = por %p911_p13, %p910_p12 }
  0x21   :  { %p913_p1 = pnand %p912_p0, %p906_p11 }
  0x23   :  { %916 = shalt.err (!%p913_p1)
}
  0x24   :  { %29 = dma.hbm_to_vmem [thread:$0]  %s1125_s1, 128, %s27_s20, [#allocation4]  }
  0x25   :  { %s917_s12 = scalar_lea.hbm %s1128_s4, 4096 }
  0x26   :  { %p918_p2 = scmp.ne.s32.totalorder %s1128_s4, %s917_s12  ;;  %p921_p3 = scmp.lt.u32.totalorder %s917_s12, %s1128_s4 }
  0x28   :  { %p923_p4 = pnand %p921_p3, %p918_p2 }
  0x2a   :  { %926 = shalt.err (!%p923_p4)
}
  0x2b   :  { %s927_s19 = scalar_lea.vmem %s50_s22, 4096  ;;  %p932_p6 = scmp.lt.s32.totalorder %s50_s22, %s50_s22 }
  0x2c   :  { %p928_p5 = scmp.ne.s32.totalorder %s50_s22, %s927_s19  ;;  %p933_p7 = scmp.lt.s32.totalorder %s927_s19, %s927_s19 }
  0x2e   :  { %p934_p8 = por %p933_p7, %p932_p6 }
  0x30   :  { %p935_p9 = pnand %p934_p8, %p928_p5 }
  0x32   :  { %938 = shalt.err (!%p935_p9)
}
  0x33   :  { %55 = dma.hbm_to_vmem [thread:$0]  %s1128_s4, 4096, %s50_s22, [#allocation7], %s992_s15, %s992_s15, %s993_s16  }
  0x34   :  { %s996_s21 = smov [#allocation9]   ;;  %s939_s26 = scalar_lea.hbm %s1130_s6, 2048 }
  0x35   :  { %s63_s23 = sshll.u32 %s996_s21, 4  ;;  %p940_p10 = scmp.ne.s32.totalorder %s1130_s6, %s939_s26  ;;  %s64_s23 = int_to_ptr.vmem [resolvable:$true] %s63_s23 }
  0x36   :  { %p943_p11 = scmp.lt.u32.totalorder %s939_s26, %s1130_s6 }
  0x38   :  { %p945_p12 = pnand %p943_p11, %p940_p10 }
  0x3a   :  { %948 = shalt.err (!%p945_p12)
}
  0x3b   :  { %s949_s28 = scalar_lea.vmem %s64_s23, 2048  ;;  %p954_p0 = scmp.lt.s32.totalorder %s64_s23, %s64_s23 }
  0x3c   :  { %p950_p13 = scmp.ne.s32.totalorder %s64_s23, %s949_s28  ;;  %p955_p1 = scmp.lt.s32.totalorder %s949_s28, %s949_s28 }
  0x3e   :  { %p956_p2 = por %p955_p1, %p954_p0 }
  0x40   :  { %p957_p3 = pnand %p956_p2, %p950_p13 }
  0x42   :  { %960 = shalt.err (!%p957_p3)
}
  0x43   :  { %s997_s4 = smov 64   ;;  %s998_s15 = smov 4  }
  0x44   :  { %69 = dma.hbm_to_vmem [thread:$0]  %s1130_s6, 2048, %s64_s23, [#allocation10], %s997_s4, %s997_s4, %s998_s15  }
  0x45   :  { %983 = dma.done.wait [#allocation4], 128  }
  0x46   :  { %984 = vsyncadd [#allocation4], 4294967168 }
  0x47   :  { %985 = dma.done.wait [#allocation7], 6144  }
  0x48   :  { %986 = vsyncadd [#allocation7], 4294961152 }
  0x49   :  { %987 = dma.done.wait [#allocation10], 2048  }
  0x4a   :  { %988 = vsyncadd [#allocation10], 4294965248  ;;  %v999_v0 = vmov 0   ;;  %v783_v1 = vld [vmem:[#allocation6 + $0x4] ss:$8 sps:$4 sm:$0xff]   ;;  %v85_v26 = vld [vmem:[#allocation3] sm:$0xff]  ;;  %v105_v63 = vlaneseq }
  0x4b   :  { %227 = vmatprep.mubr.bf16.mxu0 %v999_v0  ;;  %v785_v2 = vld [vmem:[#allocation6] ss:$8 sps:$4 sm:$0xff]   ;;  %195 = vmatprep.subr.bf16.mxu0 %v783_v1  ;;  %v786_v3 = vld [vmem:[#allocation6 + $0x14] ss:$8 sps:$4 sm:$0xff]   ;;  %v788_v4 = vld [vmem:[#allocation6 + $0x10] ss:$8 sps:$4 sm:$0xff]   ;;  %v86_v31 = vpack.c.bf16 %v85_v26, %v85_v26 }
  0x4c   :  { %196 = vmatpush1.bf16.msra.mxu0 %v785_v2  ;;  %v789_v5 = vld [vmem:[#allocation6 + $0x24] ss:$8 sps:$4 sm:$0xff]   ;;  %v791_v6 = vld [vmem:[#allocation6 + $0x20] ss:$8 sps:$4 sm:$0xff]   ;;  %v792_v7 = vld [vmem:[#allocation6 + $0x34] ss:$8 sps:$4 sm:$0xff]  }
  0x4d   :  { %197 = vmatprep.subr.bf16.mxu0 %v786_v3  ;;  %v794_v8 = vld [vmem:[#allocation6 + $0x30] ss:$8 sps:$4 sm:$0xff]   ;;  %v795_v9 = vld [vmem:[#allocation6 + $0x44] ss:$8 sps:$4 sm:$0xff]   ;;  %v809_v11 = vld [vmem:[#allocation8] ss:$8 sps:$4 sm:$0xff]  }
  0x4e   :  { %v807_v10 = vld [vmem:[#allocation8 + $0x4] ss:$8 sps:$4 sm:$0xff]   ;;  %v810_v12 = vld [vmem:[#allocation8 + $0x14] ss:$8 sps:$4 sm:$0xff]   ;;  %v797_v13 = vld [vmem:[#allocation6 + $0x40] ss:$8 sps:$4 sm:$0xff]  }
  0x4f   :  { %444 = vmatprep.subr.bf16.mxu1 %v807_v10  ;;  %v812_v14 = vld [vmem:[#allocation8 + $0x10] ss:$8 sps:$4 sm:$0xff]   ;;  %v813_v15 = vld [vmem:[#allocation8 + $0x24] ss:$8 sps:$4 sm:$0xff]   ;;  %v798_v16 = vld [vmem:[#allocation6 + $0x54] ss:$8 sps:$4 sm:$0xff]  }
  0x50   :  { %198 = vmatpush1.bf16.msra.mxu0 %v788_v4  ;;  %445 = vmatpush1.bf16.msra.mxu1 %v809_v11  ;;  %v800_v17 = vld [vmem:[#allocation6 + $0x50] ss:$8 sps:$4 sm:$0xff]   ;;  %v815_v18 = vld [vmem:[#allocation8 + $0x20] ss:$8 sps:$4 sm:$0xff]   ;;  %v816_v19 = vld [vmem:[#allocation8 + $0x34] ss:$8 sps:$4 sm:$0xff]  }
  0x51   :  { %199 = vmatprep.subr.bf16.mxu0 %v789_v5  ;;  %446 = vmatprep.subr.bf16.mxu1 %v810_v12  ;;  %v801_v20 = vld [vmem:[#allocation6 + $0x64] ss:$8 sps:$4 sm:$0xff]   ;;  %v803_v21 = vld [vmem:[#allocation6 + $0x60] ss:$8 sps:$4 sm:$0xff]   ;;  %v818_v22 = vld [vmem:[#allocation8 + $0x30] ss:$8 sps:$4 sm:$0xff]  }
  0x52   :  { %v819_v23 = vld [vmem:[#allocation8 + $0x44] ss:$8 sps:$4 sm:$0xff]   ;;  %v804_v24 = vld [vmem:[#allocation6 + $0x74] ss:$8 sps:$4 sm:$0xff]   ;;  %v806_v25 = vld [vmem:[#allocation6 + $0x70] ss:$8 sps:$4 sm:$0xff]  }
  0x53   :  { %v821_v27 = vld [vmem:[#allocation8 + $0x40] ss:$8 sps:$4 sm:$0xff]   ;;  %v822_v28 = vld [vmem:[#allocation8 + $0x54] ss:$8 sps:$4 sm:$0xff]   ;;  %v824_v29 = vld [vmem:[#allocation8 + $0x50] ss:$8 sps:$4 sm:$0xff]  }
  0x54   :  { %200 = vmatpush1.bf16.msra.mxu0 %v791_v6  ;;  %447 = vmatpush1.bf16.msra.mxu1 %v812_v14  ;;  %v825_v30 = vld [vmem:[#allocation8 + $0x64] ss:$8 sps:$4 sm:$0xff]   ;;  %v827_v32 = vld [vmem:[#allocation8 + $0x60] ss:$8 sps:$4 sm:$0xff]   ;;  %v828_v33 = vld [vmem:[#allocation8 + $0x74] ss:$8 sps:$4 sm:$0xff]  }
  0x55   :  { %201 = vmatprep.subr.bf16.mxu0 %v792_v7  ;;  %448 = vmatprep.subr.bf16.mxu1 %v813_v15  ;;  %v830_v34 = vld [vmem:[#allocation8 + $0x70] ss:$8 sps:$4 sm:$0xff]   ;;  %v831_v35 = vld [vmem:[#allocation8 + $0x84] ss:$8 sps:$4 sm:$0xff]   ;;  %v833_v36 = vld [vmem:[#allocation8 + $0x80] ss:$8 sps:$4 sm:$0xff]  }
  0x56   :  { %v834_v37 = vld [vmem:[#allocation8 + $0x94] ss:$8 sps:$4 sm:$0xff]   ;;  %v836_v38 = vld [vmem:[#allocation8 + $0x90] ss:$8 sps:$4 sm:$0xff]   ;;  %v837_v39 = vld [vmem:[#allocation8 + $0xa4] ss:$8 sps:$4 sm:$0xff]  }
  0x57   :  { %v839_v40 = vld [vmem:[#allocation8 + $0xa0] ss:$8 sps:$4 sm:$0xff]   ;;  %v840_v41 = vld [vmem:[#allocation8 + $0xb4] ss:$8 sps:$4 sm:$0xff]   ;;  %v842_v42 = vld [vmem:[#allocation8 + $0xb0] ss:$8 sps:$4 sm:$0xff]  }
  0x58   :  { %202 = vmatpush1.bf16.msra.mxu0 %v794_v8  ;;  %449 = vmatpush1.bf16.msra.mxu1 %v815_v18  ;;  %v843_v43 = vld [vmem:[#allocation8 + $0xc4] ss:$8 sps:$4 sm:$0xff]   ;;  %v845_v44 = vld [vmem:[#allocation8 + $0xc0] ss:$8 sps:$4 sm:$0xff]   ;;  %v846_v45 = vld [vmem:[#allocation8 + $0xd4] ss:$8 sps:$4 sm:$0xff]  }
  0x59   :  { %203 = vmatprep.subr.bf16.mxu0 %v795_v9  ;;  %450 = vmatprep.subr.bf16.mxu1 %v816_v19  ;;  %v848_v46 = vld [vmem:[#allocation8 + $0xd0] ss:$8 sps:$4 sm:$0xff]   ;;  %v849_v47 = vld [vmem:[#allocation8 + $0xe4] ss:$8 sps:$4 sm:$0xff]   ;;  %v851_v48 = vld [vmem:[#allocation8 + $0xe0] ss:$8 sps:$4 sm:$0xff]  }
  0x5a   :  { %v852_v49 = vld [vmem:[#allocation8 + $0xf4] ss:$8 sps:$4 sm:$0xff]   ;;  %v854_v50 = vld [vmem:[#allocation8 + $0xf0] ss:$8 sps:$4 sm:$0xff]   ;;  %v855_v51 = vld [vmem:[#allocation9 + $0x40] sm:$0xff]   ;;  %v106_v0 = vshrl.u32 %v105_v63, 7 }
  0x5b   :  { %v856_v52 = vld [vmem:[#allocation9] sm:$0xff]   ;;  %v857_v53 = vld [vmem:[#allocation9 + $0x48] sm:$0xff]   ;;  %v859_v55 = vld [vmem:[#allocation9 + $0x50] sm:$0xff]   ;;  %s1000_s14 = smov [#allocation11]  }
  0x5c   :  { %204 = vmatpush1.bf16.msra.mxu0 %v797_v13  ;;  %451 = vmatpush1.bf16.msra.mxu1 %v818_v22  ;;  %v858_v54 = vld [vmem:[#allocation9 + $0x8] sm:$0xff]   ;;  %v860_v56 = vld [vmem:[#allocation9 + $0x10] sm:$0xff]   ;;  %v861_v57 = vld [vmem:[#allocation9 + $0x58] sm:$0xff]   ;;  %v107_v1 = vsub.s32 0, %v106_v0  ;;  %v111_v3 = vsub.s32 1, %v106_v0  ;;  %s675_s17 = sshll.u32 %s1000_s14, 4  ;;  %s676_s17 = int_to_ptr.vmem [resolvable:$true] %s675_s17 }
  0x5d   :  { %205 = vmatprep.subr.bf16.mxu0 %v798_v16  ;;  %452 = vmatprep.subr.bf16.mxu1 %v819_v23  ;;  %v862_v58 = vld [vmem:[#allocation9 + $0x18] sm:$0xff]   ;;  %v863_v59 = vld [vmem:[#allocation9 + $0x60] sm:$0xff]   ;;  %v865_v61 = vld [vmem:[#allocation9 + $0x68] sm:$0xff]   ;;  %s961_s18 = scalar_lea.vmem %s676_s17, 128  ;;  %p966_p5 = scmp.lt.s32.totalorder %s676_s17, %s676_s17 }
  0x5e   :  { %v864_v60 = vld [vmem:[#allocation9 + $0x20] sm:$0xff]   ;;  %v866_v62 = vld [vmem:[#allocation9 + $0x28] sm:$0xff]   ;;  %v103_v2 = vld [vmem:[%s1127_s3] sm:$0x3]  ;;  %p962_p4 = scmp.ne.s32.totalorder %s676_s17, %s961_s18  ;;  %p967_p6 = scmp.lt.s32.totalorder %s961_s18, %s961_s18 }
  0x5f   :  { %v108_v4 = vrot.slane %v103_v2, %v107_v1  ;;  %v112_v5 = vrot.slane %v103_v2, %v111_v3  ;;  %v867_v16 = vld [vmem:[#allocation9 + $0x70] sm:$0xff]   ;;  %v869_v18 = vld [vmem:[#allocation9 + $0x78] sm:$0xff]  }
  0x60   :  { %206 = vmatpush1.bf16.msra.mxu0 %v800_v17  ;;  %453 = vmatpush1.bf16.msra.mxu1 %v821_v27  ;;  %v868_v17 = vld [vmem:[#allocation9 + $0x30] sm:$0xff]   ;;  %v870_v19 = vld [vmem:[#allocation9 + $0x38] sm:$0xff]   ;;  %p968_p7 = por %p967_p6, %p966_p5 }
  0x61   :  { %207 = vmatprep.subr.bf16.mxu0 %v801_v20  ;;  %454 = vmatprep.subr.bf16.mxu1 %v822_v28  ;;  %v272_v20 = vld [vmem:[%s1129_s5] sm:$0x3] }
  0x62   :  { %v281_v22 = vrot.slane %v272_v20, %v111_v3  ;;  %p969_p8 = pnand %p968_p7, %p962_p4 }
  0x64   :  { %208 = vmatpush1.bf16.msra.mxu0 %v803_v21  ;;  %455 = vmatpush1.bf16.msra.mxu1 %v824_v29  ;;  %v277_v21 = vrot.slane %v272_v20, %v107_v1 }
  0x65   :  { %209 = vmatprep.subr.bf16.mxu0 %v804_v24  ;;  %456 = vmatprep.subr.bf16.mxu1 %v825_v30 }
  0x68   :  { %210 = vmatpush1.bf16.msra.mxu0 %v806_v25  ;;  %457 = vmatpush1.bf16.msra.mxu1 %v827_v32 }
  0x69   :  { %458 = vmatprep.subr.bf16.mxu1 %v828_v33  ;;  %751 = vmatprep.subr.bf16.mxu0 %v855_v51 }
  0x6b   :  { %228 = vmatmul.mubr.bf16.vlgmr.msra.gmra.mrb[0].mxu0 %v86_v31 }
  0x6c   :  { %459 = vmatpush1.bf16.msra.mxu1 %v830_v34  ;;  %752 = vmatpush3.bf16.msra.mxu0 %v856_v52  ;;  %v734_v34 = vld [vmem:[%s1131_s7] ss:$0 sm:$0xff] }
  0x6d   :  { %460 = vmatprep.subr.bf16.mxu1 %v831_v35  ;;  %753 = vmatprep.subr.bf16.mxu0 %v857_v53 }
  0x70   :  { %461 = vmatpush1.bf16.msra.mxu1 %v833_v36  ;;  %754 = vmatpush3.bf16.msra.mxu0 %v858_v54 }
  0x71   :  { %462 = vmatprep.subr.bf16.mxu1 %v834_v37  ;;  %755 = vmatprep.subr.bf16.mxu0 %v859_v55 }
  0x74   :  { %463 = vmatpush1.bf16.msra.mxu1 %v836_v38  ;;  %756 = vmatpush3.bf16.msra.mxu0 %v860_v56 }
  0x75   :  { %464 = vmatprep.subr.bf16.mxu1 %v837_v39  ;;  %757 = vmatprep.subr.bf16.mxu0 %v861_v57 }
  0x78   :  { %465 = vmatpush1.bf16.msra.mxu1 %v839_v40  ;;  %758 = vmatpush3.bf16.msra.mxu0 %v862_v58  ;;  %v666_v40 = vstv %s1124_s0 }
  0x79   :  { %466 = vmatprep.subr.bf16.mxu1 %v840_v41  ;;  %759 = vmatprep.subr.bf16.mxu0 %v863_v59 }
  0x7c   :  { %467 = vmatpush1.bf16.msra.mxu1 %v842_v42  ;;  %760 = vmatpush3.bf16.msra.mxu0 %v864_v60 }
  0x7d   :  { %468 = vmatprep.subr.bf16.mxu1 %v843_v43  ;;  %761 = vmatprep.subr.bf16.mxu0 %v865_v61 }
  0x80   :  { %469 = vmatpush1.bf16.msra.mxu1 %v845_v44  ;;  %762 = vmatpush3.bf16.msra.mxu0 %v866_v62 }
  0x81   :  { %470 = vmatprep.subr.bf16.mxu1 %v846_v45  ;;  %763 = vmatprep.subr.bf16.mxu0 %v867_v16 }
  0x84   :  { %471 = vmatpush1.bf16.msra.mxu1 %v848_v46  ;;  %764 = vmatpush3.bf16.msra.mxu0 %v868_v17 }
  0x85   :  { %472 = vmatprep.subr.bf16.mxu1 %v849_v47  ;;  %765 = vmatprep.subr.bf16.mxu0 %v869_v18 }
  0x88   :  { %473 = vmatpush1.bf16.msra.mxu1 %v851_v48  ;;  %766 = vmatpush3.bf16.msra.mxu0 %v870_v19 }
  0x89   :  { %474 = vmatprep.subr.bf16.mxu1 %v852_v49 }
  0x8c   :  { %475 = vmatpush1.bf16.msra.mxu1 %v854_v50 }
 0x13e   :  { %v229_v6 = vpop.f32.mrb[0].mxu0 }
 0x13f   :  { %v230_v7 = vadd.f32 %v229_v6, %v108_v4  ;;  %v231_v8 = vpop.f32.mrb[1].mxu0 }
 0x140   :  { %v232_v9 = vadd.f32 %v231_v8, %v112_v5  ;;  %v233_v10 = vpop.f32.mrb[2].mxu0 }
 0x141   :  { %v236_v11 = vmax.f32 %v230_v7, 0.0  ;;  %v234_v12 = vpop.f32.mrb[3].mxu0 }
 0x142   :  { %v237_v13 = vmax.f32 %v232_v9, 0.0 }
 0x143   :  { %v238_v15 = vpack.c.bf16 %v236_v11, %v236_v11 }
 0x144   :  { %v239_v14 = vpack.c.bf16 %v237_v13, %v237_v13 }
 0x146   :  { %476 = vmatprep.mubr.bf16.mxu1 %v239_v14 }
 0x147   :  { %477 = vmatmul.mubr.bf16.vlgmr.msra.gmra.mrb[0].mxu1 %v238_v15 }
 0x21a   :  { %v478_v23 = vpop.f32.mrb[0].mxu1 }
 0x21b   :  { %v479_v24 = vadd.f32 %v478_v23, %v277_v21  ;;  %v480_v25 = vpop.f32.mrb[1].mxu1 }
 0x21c   :  { %v481_v26 = vadd.f32 %v480_v25, %v281_v22  ;;  %v482_v27 = vpop.f32.mrb[2].mxu1 }
 0x21d   :  { %v485_v28 = vmax.f32 %v479_v24, 0.0  ;;  %v483_v29 = vpop.f32.mrb[3].mxu1 }
 0x21e   :  { %v486_v30 = vmax.f32 %v481_v26, 0.0 }
 0x21f   :  { %v487_v32 = vpack.c.bf16 %v485_v28, %v485_v28 }
 0x220   :  { %v488_v31 = vpack.c.bf16 %v486_v30, %v486_v30 }
 0x222   :  { %657 = vmatprep.mubr.bf16.mxu0 %v488_v31 }
 0x223   :  { %658 = vmatmul.mubr.bf16.vlgmr.msra.gmra.mrb[4].mxu0 %v487_v32 }
 0x2f6   :  { %v767_v33 = vpop.f32.mrb[4].mxu0 }
 0x2f7   :  { %v768_v35 = vpop.f32.mrb[5].mxu0 }
 0x2f8   :  { %v769_v36 = vadd.f32 %v768_v35, %v767_v33  ;;  %v770_v37 = vpop.f32.mrb[6].mxu0 }
 0x2f9   :  { %v771_v38 = vpop.f32.mrb[7].mxu0 }
 0x2fa   :  { %v660_v39 = vadd.f32 %v769_v36, %v734_v34 }
 0x2fc   :  { %871 = vtanh.f32 %v660_v39 }
 0x306   :  { %v872_v41 = vpop.eup %871 }
 0x307   :  { %v667_v42 = vmul.f32 %v872_v41, %v666_v40 }
 0x309   :  { %668 = vst [vmem:[#allocation11] sm:$0xff] %v667_v42 }
 0x30a   :  { %972 = shalt.err (!%p969_p8)
}
 0x30b   :  { %s973_s1 = scalar_lea.hbm %s1132_s8, 128 }
 0x30c   :  { %p974_p9 = scmp.ne.s32.totalorder %s1132_s8, %s973_s1  ;;  %p977_p10 = scmp.lt.u32.totalorder %s973_s1, %s1132_s8 }
 0x30e   :  { %p979_p11 = pnand %p977_p10, %p974_p9 }
 0x310   :  { %982 = shalt.err (!%p979_p11)
}
 0x311   :  { %678 = dma.vmem_to_hbm [thread:$0]  %s676_s17, 128, %s1132_s8, [#allocation5]  }
 0x312   :  { %989 = dma.done.wait [#allocation5], 128  }
 0x313   :  { %990 = vsyncadd [#allocation5], 4294967168 }
 0x314   :  { %682 = vsyncpa [#allocation4], 1 }
 0x315   :  { %683 = vsyncpa [#allocation7], 1 }
 0x316   :  { %684 = vsyncpa [#allocation10], 1 }
 0x317   :  { %685 = vsyncpa [#allocation5], 1 }

</bundles_post_ra>
